<compile_context>
chip_gen: v7x
topology: tpu7x:2x2x1
jax: 0.10.0
libtpu: 0.0.40
codegen_flags: <defaults>
</compile_context>

<pallas_src>
import jax
import jax.numpy as jnp
from jax.experimental import pallas as pl
from jax.experimental.pallas import tpu as pltpu


# ---------------------------------------------------------------------------
# Kernels
# ---------------------------------------------------------------------------
def _mtl_linear_bias_kernel(x_ref, w_ref, b_ref, o_ref):
    """Single matmul + bias, written straight to the output tile.

    Used both for the whole-array single-block path and for the tiled path
    when the K (reduction) grid has exactly one step (no accumulator needed).
    """
    acc = jnp.dot(x_ref[...], w_ref[...], preferred_element_type=jnp.float32)
    o_ref[...] = (acc + b_ref[...].astype(jnp.float32)).astype(o_ref.dtype)


def _mtl_linear_tiled_acc_kernel(x_ref, w_ref, b_ref, o_ref, acc_ref):
    """K-grid > 1, non-f32 output: f32 VMEM accumulator, bias folded into
    the k==0 init, single cast/store at the last K step."""
    k = pl.program_id(2)

    @pl.when(k == 0)
    def _():
        acc_ref[...] = jnp.broadcast_to(b_ref[...].astype(jnp.float32),
                                        acc_ref.shape)

    acc_ref[...] += jnp.dot(x_ref[...], w_ref[...],
                            preferred_element_type=jnp.float32)

    @pl.when(k == pl.num_programs(2) - 1)
    def _():
        o_ref[...] = acc_ref[...].astype(o_ref.dtype)


def _mtl_linear_tiled_f32out_kernel(x_ref, w_ref, b_ref, o_ref):
    """K-grid > 1, f32 output: accumulate directly in the resident output
    block (no scratch, no final copy).  Bias seeds the accumulator."""
    k = pl.program_id(2)

    @pl.when(k == 0)
    def _():
        o_ref[...] = jnp.broadcast_to(b_ref[...].astype(o_ref.dtype),
                                      o_ref.shape)

    o_ref[...] += jnp.dot(x_ref[...], w_ref[...],
                          preferred_element_type=jnp.float32)


# ---------------------------------------------------------------------------
# Tiling helpers
# ---------------------------------------------------------------------------
def _sublane_align(*dtypes):
    """Sublane alignment for the second-to-last tile dim: 8 for f32, 16 for
    bf16, 32 for int8/fp8 (avoids packed-sublane partial tiles / relayouts)."""
    return max(8 * (4 // jnp.dtype(d).itemsize) for d in dtypes)


def _choose_tile(dim, target, align):
    """Largest tile <= target that is a multiple of `align` and divides `dim`
    evenly; returns the full dim if dim <= target (full dims are always legal
    w.r.t. the (8,128) rule) or if no clean divisor exists."""
    if dim <= target:
        return dim
    t = (min(target, dim) // align) * align
    while t >= align and dim % t:
        t -= align
    if t < align:
        return dim
    return t


def _fit_tiles(B, N, K, tm_target, tn_target, tk_target,
               m_align, in_isize, out_isize, bias_isize, budget_bytes):
    """Pick (tm, tn, tk) under a live-VMEM budget.

    Guards the full-dim fallback of _choose_tile: if the double-buffered
    footprint would overshoot the budget (most acute on v7x's 64 MiB VMEM),
    tn/tk are shrunk instead of silently emitting a giant block.
    """
    tm = _choose_tile(B, tm_target, m_align)

    # v7x megacore: with tiny B the M grid is 1, so N is the only axis that
    # can shard across the two TensorCores — keep the N grid >= 2 blocks.
    if B // tm <= 1 and N >= 2 * 128:
        tn_target = min(tn_target, max(128, (N // 2) // 128 * 128))

    tn = _choose_tile(N, tn_target, 128)
    tk = _choose_tile(K, tk_target, 128)

    def footprint(tm_, tn_, tk_):
        # double-buffered inputs + output + f32 scratch (conservative) + bias
        return (2 * (tm_ * tk_ + tk_ * tn_) * in_isize
                + 2 * tm_ * tn_ * out_isize
                + tm_ * tn_ * 4
                + 2 * tn_ * bias_isize)

    while footprint(tm, tn, tk) > budget_bytes:
        new_tn = _choose_tile(N, max(128, tn // 2), 128) if tn > 128 else tn
        new_tk = _choose_tile(K, max(128, tk // 2), 128) if tk > 128 else tk
        if tn >= tk and new_tn < tn:
            tn = new_tn
        elif new_tk < tk:
            tk = new_tk
        elif new_tn < tn:
            tn = new_tn
        else:
            break  # non-divisible dims; cannot shrink further
    return tm, tn, tk


# ---------------------------------------------------------------------------
# One-time parameter preparation (keep casts OUT of the per-call hot path)
# ---------------------------------------------------------------------------
def cast_mtl_params(x, weight, bias, compute_dtype):
    """Cast activations/params to the compute dtype once (e.g. bf16), outside
    the forward.  Accumulation inside the kernel stays f32 regardless."""
    return (x.astype(compute_dtype), weight.astype(compute_dtype),
            bias.astype(compute_dtype))


# ---------------------------------------------------------------------------
# Wrapper
# ---------------------------------------------------------------------------
def mtl_module_forward(latent_features, weight, bias, mtl_token_num, *,
                       tile_m=256, tile_n=1024, tile_k=2048,
                       single_block=None,
                       vmem_budget_bytes=40 << 20):
    """latent_features: [B, D], weight: [D, T*D], bias: [T*D] -> [B, T, D].

    All operands are consumed in the dtype they are passed in (no hidden
    per-call casts); use `cast_mtl_params` once at init for bf16 weights.
    """
    B, D = latent_features.shape
    out_dim = mtl_token_num * D
    assert weight.shape == (D, out_dim)
    assert bias.shape == (out_dim,)

    x = latent_features
    w = weight
    out_dtype = x.dtype
    bias2d = bias.reshape(1, out_dim)

    in_isize = max(x.dtype.itemsize, w.dtype.itemsize)
    out_isize = jnp.dtype(out_dtype).itemsize
    in_bytes = (B * D * x.dtype.itemsize + D * out_dim * w.dtype.itemsize
                + out_dim * bias2d.dtype.itemsize)
    out_bytes = B * out_dim * out_isize
    cost = pl.CostEstimate(flops=2 * B * D * out_dim,
                           transcendentals=0,
                           bytes_accessed=in_bytes + out_bytes)

    if single_block is None:
        # At small shapes grid/pipeline bookkeeping dominates; one DMA in,
        # one matmul, one DMA out is strictly cheaper.
        single_block = (in_bytes + out_bytes) <= (8 << 20)

    if single_block:
        y = pl.pallas_call(
            _mtl_linear_bias_kernel,
            out_shape=jax.ShapeDtypeStruct((B, out_dim), out_dtype),
            compiler_params=pltpu.CompilerParams(
                vmem_limit_bytes=32 << 20),
            cost_estimate=cost,
        )(x, w, bias2d)
    else:
        m_align = _sublane_align(x.dtype, out_dtype)
        tm, tn, tk = _fit_tiles(B, out_dim, D, tile_m, tile_n, tile_k,
                                m_align, in_isize, out_isize,
                                bias2d.dtype.itemsize, vmem_budget_bytes)
        grid_m, grid_n, grid_k = B // tm, out_dim // tn, D // tk

        footprint = (2 * (tm * tk + tk * tn) * in_isize
                     + 2 * tm * tn * out_isize
                     + tm * tn * 4
                     + 2 * tn * bias2d.dtype.itemsize)
        vmem_limit = int(min(64 << 20, max(32 << 20, footprint * 3 // 2)))

        if grid_k == 1:
            kernel = _mtl_linear_bias_kernel          # no scratch needed
            scratch = []
        elif jnp.dtype(out_dtype) == jnp.dtype(jnp.float32):
            kernel = _mtl_linear_tiled_f32out_kernel  # accumulate in o_ref
            scratch = []
        else:
            kernel = _mtl_linear_tiled_acc_kernel     # f32 scratch accumulator
            scratch = [pltpu.VMEM((tm, tn), jnp.float32)]

        y = pl.pallas_call(
            kernel,
            out_shape=jax.ShapeDtypeStruct((B, out_dim), out_dtype),
            grid=(grid_m, grid_n, grid_k),
            in_specs=[
                pl.BlockSpec((tm, tk), lambda i, j, k: (i, k)),   # activations
                pl.BlockSpec((tk, tn), lambda i, j, k: (k, j)),   # weights
                pl.BlockSpec((1, tn), lambda i, j, k: (0, j)),    # bias
            ],
            out_specs=pl.BlockSpec((tm, tn), lambda i, j, k: (i, j)),
            scratch_shapes=scratch,
            compiler_params=pltpu.CompilerParams(
                dimension_semantics=("parallel", "parallel", "arbitrary"),
                vmem_limit_bytes=vmem_limit,
            ),
            cost_estimate=cost,
        )(x, w, bias2d)

    # .view(-1, T, D) — output stays lane-dense [B, T*D] inside the kernel;
    # this reshape is metadata-only on the packed 2-D result.
    return y.reshape(-1, mtl_token_num, D)


# ---------------------------------------------------------------------------
# Test
# ---------------------------------------------------------------------------
if __name__ == "__main__":
    key = jax.random.PRNGKey(0)
    kx, kw, kb, kx2, kw2, kb2 = jax.random.split(key, 6)

    # --- 1) Tiny module-typical config (single-block fast path, f32) -------
    B, D, T = 2, 32, 4
    bound = 1.0 / (D ** 0.5)
    x = jax.random.normal(kx, (B, D), dtype=jnp.float32)
    w = jax.random.uniform(kw, (D, T * D), minval=-bound, maxval=bound,
                           dtype=jnp.float32)
    b = jax.random.uniform(kb, (T * D,), minval=-bound, maxval=bound,
                           dtype=jnp.float32)

    out = jax.block_until_ready(mtl_module_forward(x, w, b, T))
    ref = (jnp.dot(x, w, precision=jax.lax.Precision.HIGHEST) + b
           ).reshape(-1, T, D)
    assert out.shape == (B, T, D)
    assert jnp.allclose(out, ref, atol=1e-5, rtol=1e-5)

    # --- 2) Larger config, tiled path, bf16 compute (cast ONCE up front) ---
    B2, D2, T2 = 8, 256, 4
    bound2 = 1.0 / (D2 ** 0.5)
    x2 = jax.random.normal(kx2, (B2, D2), dtype=jnp.float32)
    w2 = jax.random.uniform(kw2, (D2, T2 * D2), minval=-bound2, maxval=bound2,
                            dtype=jnp.float32)
    b2 = jax.random.uniform(kb2, (T2 * D2,), minval=-bound2, maxval=bound2,
                            dtype=jnp.float32)

    x2_bf, w2_bf, b2_bf = cast_mtl_params(x2, w2, b2, jnp.bfloat16)
    out2 = mtl_module_forward(x2_bf, w2_bf, b2_bf, T2, single_block=False,
                              tile_m=8, tile_n=512, tile_k=128)  # K grid = 2
    out2 = jax.block_until_ready(out2)
    ref2 = (jnp.dot(x2_bf.astype(jnp.float32), w2_bf.astype(jnp.float32),
                    precision=jax.lax.Precision.HIGHEST)
            + b2_bf.astype(jnp.float32)).reshape(-1, T2, D2)
    assert out2.shape == (B2, T2, D2)
    assert jnp.allclose(out2.astype(jnp.float32), ref2, atol=2e-2, rtol=2e-2)

    # --- 3) Tiled path, f32 output, K grid > 1 (accumulate-in-output) ------
    out3 = mtl_module_forward(x2, w2, b2, T2, single_block=False,
                              tile_m=8, tile_n=512, tile_k=128)
    out3 = jax.block_until_ready(out3)
    ref3 = (jnp.dot(x2, w2, precision=jax.lax.Precision.HIGHEST) + b2
            ).reshape(-1, T2, D2)
    assert jnp.allclose(out3, ref3, atol=1e-4, rtol=1e-4)

    # --- 4) Tiled path, f32, K grid == 1 (no-scratch specialization) -------
    out4 = mtl_module_forward(x2, w2, b2, T2, single_block=False,
                              tile_m=8, tile_n=512, tile_k=256)
    out4 = jax.block_until_ready(out4)
    assert jnp.allclose(out4, ref3, atol=1e-4, rtol=1e-4)

    print("KERNEL_OK")
</pallas_src>

<mosaic_0001>
module attributes {stable_mosaic.version = 11 : i64} {
  func.func @_mtl_linear_bias_kernel(%arg0: memref<2x32xf32, #tpu.memory_space<vmem>>, %arg1: memref<32x128xf32, #tpu.memory_space<vmem>>, %arg2: memref<1x128xf32, #tpu.memory_space<vmem>>, %arg3: memref<2x128xf32, #tpu.memory_space<vmem>>) attributes {dimension_semantics = [], scalar_prefetch = 0 : i64, scratch_operands = 0 : i64, tpu.core_type = #tpu.core_type<tc>} {
    %c0 = arith.constant 0 : index
    %c0_0 = arith.constant 0 : index
    %0 = vector.load %arg0[%c0, %c0_0] : memref<2x32xf32, #tpu.memory_space<vmem>>, vector<2x32xf32>
    %c0_1 = arith.constant 0 : index
    %c0_2 = arith.constant 0 : index
    %1 = vector.load %arg1[%c0_1, %c0_2] : memref<32x128xf32, #tpu.memory_space<vmem>>, vector<32x128xf32>
    %cst = arith.constant dense<0.000000e+00> : vector<2x128xf32>
    %2 = tpu.matmul %0, %1, %cst {dimension_numbers = #tpu.dot_dimension_numbers<[1], [0], [0], [1], [0, 0, 1, 1], [], []>} : vector<2x32xf32>, vector<32x128xf32>, vector<2x128xf32> -> vector<2x128xf32>
    %c0_3 = arith.constant 0 : index
    %c0_4 = arith.constant 0 : index
    %3 = vector.load %arg2[%c0_3, %c0_4] : memref<1x128xf32, #tpu.memory_space<vmem>>, vector<1x128xf32>
    %4 = vector.broadcast %3 : vector<1x128xf32> to vector<2x128xf32>
    %5 = arith.addf %2, %4 : vector<2x128xf32>
    %c0_5 = arith.constant 0 : index
    %c0_6 = arith.constant 0 : index
    %6 = vector.load %arg3[%c0_5, %c0_6] : memref<2x128xf32, #tpu.memory_space<vmem>>, vector<2x128xf32>
    tpu.vector_store %arg3[%c0_5, %c0_6], %5 {strides = array<i32>} : memref<2x128xf32, #tpu.memory_space<vmem>>, vector<2x128xf32>,
    return
  }
}

</mosaic_0001>

<bundles_post_ra>
// kernel: tpu_custom_call.1
= control target key start
LH: loop header
LB: loop body
LE: loop exit
PB: predicated region body
PF: predicated region fallthrough
CT: control target
= control target key end

     0   :  { %8 = vsyncpa [#allocation3], 0  ;;  %s322_s0 = inlined_call_operand.hbm [shape: f32[2,32], index: 0, kind: input, shape index: {}]   ;;  %s323_s1 = inlined_call_operand.hbm [shape: f32[32,128], index: 1, kind: input, shape index: {}]   ;;  %s324_s2 = inlined_call_operand.vmem [shape: f32[1,128], index: 2, kind: input, shape index: {}]   ;;  %s325_s3 = inlined_call_operand.hbm [shape: f32[2,128], index: 3, kind: output, shape index: {}]  }
   0x1   :  { %9 = vsyncpa [#allocation6], 0 }
   0x2   :  { %10 = vsyncpa [#allocation4], 0  ;;  %s248_s12 = smov [#allocation2]   ;;  %s249_s14 = smov [#allocation5]  }
   0x3   :  { %s17_s13 = sshll.u32 %s248_s12, 4  ;;  %s26_s15 = sshll.u32 %s249_s14, 4  ;;  %s18_s13 = int_to_ptr.vmem [resolvable:$true] %s17_s13  ;;  %s276_s15 = int_to_ptr.vmem [resolvable:$true] %s26_s15 }
   0x4   :  { %s176_s18 = scalar_lea.hbm %s322_s0, 32 }
   0x5   :  { %p177_p0 = scmp.ne.s32.totalorder %s322_s0, %s176_s18  ;;  %p180_p1 = scmp.lt.u32.totalorder %s176_s18, %s322_s0 }
   0x7   :  { %p182_p2 = pnand %p180_p1, %p177_p0 }
   0x9   :  { %185 = shalt.err (!%p182_p2)
}
   0xa   :  { %s186_s23 = scalar_lea.vmem %s18_s13, 32  ;;  %p191_p4 = scmp.lt.s32.totalorder %s18_s13, %s18_s13 }
   0xb   :  { %p187_p3 = scmp.ne.s32.totalorder %s18_s13, %s186_s23  ;;  %p192_p5 = scmp.lt.s32.totalorder %s186_s23, %s186_s23 }
   0xd   :  { %p193_p6 = por %p192_p5, %p191_p4 }
   0xf   :  { %p194_p7 = pnand %p193_p6, %p187_p3 }
  0x11   :  { %197 = shalt.err (!%p194_p7)
}
  0x12   :  { %20 = dma.hbm_to_vmem [thread:$0]  %s322_s0, 32, %s18_s13, [#allocation3]  }
  0x13   :  { %s198_s28 = scalar_lea.hbm %s323_s1, 512 }
  0x14   :  { %p199_p8 = scmp.ne.s32.totalorder %s323_s1, %s198_s28  ;;  %p202_p9 = scmp.lt.u32.totalorder %s198_s28, %s323_s1 }
  0x16   :  { %p204_p10 = pnand %p202_p9, %p199_p8 }
  0x18   :  { %207 = shalt.err (!%p204_p10)
}
  0x19   :  { %s208_s6 = scalar_lea.vmem %s276_s15, 512  ;;  %p213_p12 = scmp.lt.s32.totalorder %s276_s15, %s276_s15 }
  0x1a   :  { %p209_p11 = scmp.ne.s32.totalorder %s276_s15, %s208_s6  ;;  %p214_p13 = scmp.lt.s32.totalorder %s208_s6, %s208_s6 }
  0x1c   :  { %p215_p0 = por %p214_p13, %p213_p12 }
  0x1e   :  { %p216_p1 = pnand %p215_p0, %p209_p11 }
  0x20   :  { %219 = shalt.err (!%p216_p1)
}
  0x21   :  { %s250_s0 = smov 128   ;;  %s251_s7 = smov 8  }
  0x22   :  { %32 = dma.hbm_to_vmem [thread:$0]  %s323_s1, 512, %s276_s15, [#allocation6], %s250_s0, %s250_s0, %s251_s7  }
  0x23   :  { %242 = dma.done.wait [#allocation3], 32  }
  0x24   :  { %243 = vsyncadd [#allocation3], 4294967264 }
  0x25   :  { %244 = dma.done.wait [#allocation6], 512  }
  0x26   :  { %245 = vsyncadd [#allocation6], 4294966784  ;;  %v252_v0 = vmov 0.0|0.0   ;;  %vm253_vm0 = vmmov 0   ;;  %v254_v1 = vmov 0.0   ;;  %v42_v2 = vld [vmem:[#allocation5] sm:$0xff] }
  0x27   :  { %162 = vmatprep.subr.bf16.mxu0 %v252_v0  ;;  %159 = vmatprep.mubr.msk.f32.mxu0 %vm253_vm0, %v254_v1  ;;  %v43_v3 = vld [vmem:[#allocation5 + $0x8] sm:$0xff]  ;;  %v44_v4 = vld [vmem:[#allocation5 + $0x10] sm:$0xff]  ;;  %v45_v6 = vld [vmem:[#allocation5 + $0x18] sm:$0xff]  ;;  %vm53_vm1 = vcmask 261120   ;;  %s255_s11 = smov [#allocation7]  }
  0x28   :  { %v163_v5 = vpack.c.bf16 %v43_v3, %v42_v2  ;;  %v166_v7 = vpack.c.bf16 %v45_v6, %v44_v4  ;;  %v41_v8 = vld [vmem:[#allocation2] sm:$0x3]  ;;  %s134_s12 = sshll.u32 %s255_s11, 4  ;;  %s135_s12 = int_to_ptr.vmem [resolvable:$true] %s134_s12 }
  0x29   :  { %v144_v9 = vld [vmem:[%s324_s2] ss:$0 sm:$0xff]  ;;  %s220_s13 = scalar_lea.vmem %s135_s12, 32  ;;  %p225_p3 = scmp.lt.s32.totalorder %s135_s12, %s135_s12 }
  0x2a   :  { %164 = vmatpush3.bf16.msra.mxu0 %v163_v5  ;;  %p221_p2 = scmp.ne.s32.totalorder %s135_s12, %s220_s13  ;;  %p226_p4 = scmp.lt.s32.totalorder %s220_s13, %s220_s13 }
  0x2b   :  { %165 = vmatprep.subr.bf16.mxu0 %v252_v0 }
  0x2c   :  { %p227_p5 = por %p226_p4, %p225_p3 }
  0x2e   :  { %167 = vmatpush3.bf16.msra.mxu0 %v166_v7  ;;  %p228_p6 = pnand %p227_p5, %p221_p2 }
  0x31   :  { %160 = vmatmul.mubr.msk.f32.vlgmr.msra.gmra.mrb[0].mxu0 %vm53_vm1, %v41_v8 }
 0x104   :  { %v123_v10 = vpop.f32.mrb[0].mxu0 }
 0x105   :  { %v124_v11 = vadd.f32 %v144_v9, %v123_v10  ;;  %v161_v12 = vpop.f32.mrb[1].mxu0 }
 0x107   :  { %127 = vst [vmem:[#allocation7] sm:$0x3] %v124_v11 }
 0x108   :  { %231 = shalt.err (!%p228_p6)
}
 0x109   :  { %s232_s16 = scalar_lea.hbm %s325_s3, 32 }
 0x10a   :  { %p233_p7 = scmp.ne.s32.totalorder %s325_s3, %s232_s16  ;;  %p236_p8 = scmp.lt.u32.totalorder %s232_s16, %s325_s3 }
 0x10c   :  { %p238_p9 = pnand %p236_p8, %p233_p7 }
 0x10e   :  { %241 = shalt.err (!%p238_p9)
}
 0x10f   :  { %137 = dma.vmem_to_hbm [thread:$0]  %s135_s12, 32, %s325_s3, [#allocation4]  }
 0x110   :  { %246 = dma.done.wait [#allocation4], 32  }
 0x111   :  { %247 = vsyncadd [#allocation4], 4294967264 }
 0x112   :  { %141 = vsyncpa [#allocation3], 1 }
 0x113   :  { %142 = vsyncpa [#allocation6], 1 }
 0x114   :  { %143 = vsyncpa [#allocation4], 1 }

</bundles_post_ra>
